<compile_context>
chip_gen: v5e
topology: v5e:2x2
jax: 0.10.0
libtpu: 0.0.40
codegen_flags: <defaults>
</compile_context>

<pallas_src>
import functools

import jax
import jax.numpy as jnp
from jax.experimental import pallas as pl
from jax.experimental.pallas import tpu as pltpu


def _two_dot_kernel(x1_ref, x2_ref, wfs_ref, bfs_ref, wsc_ref, bsc_ref,
                    o1_ref, o2_ref):
    # Two K=half GEMMs on the MXU, f32 accumulation; bias+tanh in f32,
    # narrowing (if any) only at the store.
    y1 = jnp.dot(x1_ref[...], wfs_ref[...],
                 preferred_element_type=jnp.float32) + bfs_ref[...]
    y2 = jnp.dot(x2_ref[...], wsc_ref[...],
                 preferred_element_type=jnp.float32) + bsc_ref[...]
    o1_ref[...] = jnp.tanh(y1).astype(o1_ref.dtype)
    o2_ref[...] = jnp.tanh(y2).astype(o2_ref.dtype)


def _fused_bd_kernel(emb_size, feat_ref, w_ref, b_ref, o1_ref, o2_ref):
    # One [tb, input_size] @ [input_size, 2*emb] block-diagonal GEMM (avoids
    # sub-lane slicing of the feature tile when half < 128); split the register
    # value at the lane-aligned emb boundary into the two output refs.
    y = jnp.dot(feat_ref[...], w_ref[...],
                preferred_element_type=jnp.float32) + b_ref[...]
    y = jnp.tanh(y)
    o1_ref[...] = y[:, :emb_size].astype(o1_ref.dtype)
    o2_ref[...] = y[:, emb_size:].astype(o2_ref.dtype)


def _round_up(x, m):
    return ((x + m - 1) // m) * m


def roberta_cosine_head(features, w_fs, b_fs, w_sc, b_sc, *, input_size,
                        add_fc_layer=True, block_rows=2048, out_dtype=None,
                        min_grid_steps=4):
    """features: [B, >=input_size].  w_*: [input_size//2, emb_size]
    (pre-transposed nn.Linear weights), b_*: [emb_size].
    Returns (emb1, emb2), each [B, emb_size] (or [B, input_size//2] splits when
    add_fc_layer is False).  out_dtype=jnp.bfloat16 narrows only the HBM-facing
    stores (math stays f32)."""
    half = input_size // 2
    B, feat_width = features.shape

    if not add_fc_layer:
        # No compute — just the split (pure glue, nothing for a kernel to do).
        return features[:, :half], features[:, half:input_size]

    emb_size = w_fs.shape[1]
    out_dtype = features.dtype if out_dtype is None else jnp.dtype(out_dtype)

    # Row tile: multiple of 8 (f32 sublane), capped so we get at least
    # `min_grid_steps` grid steps when the batch allows it (keeps both v7x TCs
    # busy and lets the pipeline overlap), and capped at block_rows so
    # double-buffered tiles stay comfortably inside VMEM on every generation.
    tb_cap = max(8, _round_up(pl.cdiv(B, min_grid_steps), 8))
    tb = min(block_rows, tb_cap, _round_up(B, 8))
    grid = (pl.cdiv(B, tb),)   # ragged last block handled by Pallas masking

    two_dot = (half % 128 == 0)

    # Explicit VMEM budget: 2x double-buffered (feat tile + both out tiles)
    # + resident weights, with margin; capped at 48 MiB for v7x's 64 MiB VMEM.
    in_itm = features.dtype.itemsize
    out_itm = out_dtype.itemsize
    w_itm = w_fs.dtype.itemsize
    step_bytes = tb * input_size * in_itm + 2 * tb * emb_size * out_itm
    w_bytes = (emb_size * input_size if two_dot else 2 * emb_size * input_size) * w_itm
    vmem_limit = int(min(max(2 * (2 * step_bytes + 2 * w_bytes), 16 << 20), 48 << 20))

    compiler_params = pltpu.CompilerParams(
        dimension_semantics=("parallel",), vmem_limit_bytes=vmem_limit)
    out_shape = (jax.ShapeDtypeStruct((B, emb_size), out_dtype),
                 jax.ShapeDtypeStruct((B, emb_size), out_dtype))
    out_specs = [pl.BlockSpec((tb, emb_size), lambda i: (i, 0)),
                 pl.BlockSpec((tb, emb_size), lambda i: (i, 0))]

    b_fs2 = b_fs.reshape(1, emb_size)
    b_sc2 = b_sc.reshape(1, emb_size)

    if two_dot:
        # Lane-aligned halves: window the (possibly wider-than-input_size)
        # feature array twice — no wrapper slice copy, no in-kernel slicing.
        emb1, emb2 = pl.pallas_call(
            _two_dot_kernel,
            out_shape=out_shape,
            grid=grid,
            in_specs=[
                pl.BlockSpec((tb, half), lambda i: (i, 0)),        # emb1 half
                pl.BlockSpec((tb, half), lambda i: (i, 1)),        # emb2 half
                pl.BlockSpec((half, emb_size), lambda i: (0, 0)),  # resident W_fs
                pl.BlockSpec((1, emb_size), lambda i: (0, 0)),     # resident b_fs
                pl.BlockSpec((half, emb_size), lambda i: (0, 0)),  # resident W_sc
                pl.BlockSpec((1, emb_size), lambda i: (0, 0)),     # resident b_sc
            ],
            out_specs=out_specs,
            compiler_params=compiler_params,
        )(features, features, w_fs, b_fs2, w_sc, b_sc2)
        return emb1, emb2

    # Non-lane-aligned half (e.g. 32): fuse into one block-diagonal GEMM so the
    # kernel never slices the feature tile at a sub-lane offset.
    #   [x1, x2] @ [[W_fs, 0], [0, W_sc]] = [x1@W_fs, x2@W_sc]
    if feat_width != input_size and input_size % 128 != 0:
        # Unavoidable copy only in this corner case (wider input + unaligned
        # window); otherwise the BlockSpec windows the array directly.
        features = features[:, :input_size]
    zeros = jnp.zeros((half, emb_size), w_fs.dtype)
    w_bd = jnp.concatenate(
        [jnp.concatenate([w_fs, zeros], axis=1),
         jnp.concatenate([zeros, w_sc], axis=1)], axis=0)   # [input_size, 2*emb]
    b_cat = jnp.concatenate([b_fs, b_sc]).reshape(1, 2 * emb_size)

    emb1, emb2 = pl.pallas_call(
        functools.partial(_fused_bd_kernel, emb_size),
        out_shape=out_shape,
        grid=grid,
        in_specs=[
            pl.BlockSpec((tb, input_size), lambda i: (i, 0)),            # rows
            pl.BlockSpec((input_size, 2 * emb_size), lambda i: (0, 0)),  # resident W
            pl.BlockSpec((1, 2 * emb_size), lambda i: (0, 0)),           # resident b
        ],
        out_specs=out_specs,
        compiler_params=compiler_params,
    )(features, w_bd, b_cat)
    return emb1, emb2


def _init_linear(key, fan_in, fan_out, dtype=jnp.float32):
    # Deterministic init mimicking PyTorch nn.Linear: U(-1/sqrt(fan_in), ...).
    kw, kb = jax.random.split(key)
    bound = 1.0 / jnp.sqrt(jnp.float32(fan_in))
    # Stored already transposed: [in, out].
    w = jax.random.uniform(kw, (fan_in, fan_out), dtype, -bound, bound)
    b = jax.random.uniform(kb, (fan_out,), dtype, -bound, bound)
    return w, b


if __name__ == "__main__":
    key = jax.random.PRNGKey(0)
    k1, k2, k3, k4, k5, k6 = jax.random.split(key, 6)

    emb = 128   # local_config['emb_size_for_cosine']

    # ---- Case 1: half=32 -> block-diagonal single-GEMM path, ragged batch
    #      (B=12, tb=8 -> 2 grid steps, last block masked).
    B1, in1 = 12, 64
    h1 = in1 // 2
    feats1 = jax.random.normal(k1, (B1, in1), jnp.float32)
    w_fs1, b_fs1 = _init_linear(k2, h1, emb)
    w_sc1, b_sc1 = _init_linear(k3, h1, emb)

    e1, e2 = roberta_cosine_head(feats1, w_fs1, b_fs1, w_sc1, b_sc1,
                                 input_size=in1, add_fc_layer=True)
    jax.block_until_ready((e1, e2))
    r1 = jnp.tanh(feats1[:, :h1] @ w_fs1 + b_fs1)
    r2 = jnp.tanh(feats1[:, h1:in1] @ w_sc1 + b_sc1)
    assert e1.shape == (B1, emb) and e2.shape == (B1, emb)
    assert jnp.allclose(e1, r1, atol=2e-4), "case1 emb1 mismatch"
    assert jnp.allclose(e2, r2, atol=2e-4), "case1 emb2 mismatch"

    # ---- Case 2: half=128 (lane-aligned) -> two-GEMM path; features wider than
    #      input_size, windowed directly by BlockSpecs (no wrapper slice copy).
    B2, in2 = 20, 256
    h2 = in2 // 2
    feats2 = jax.random.normal(k4, (B2, in2 + 128), jnp.float32)
    w_fs2, b_fs2 = _init_linear(k5, h2, emb)
    w_sc2, b_sc2 = _init_linear(k6, h2, emb)

    f1, f2 = roberta_cosine_head(feats2, w_fs2, b_fs2, w_sc2, b_sc2,
                                 input_size=in2, add_fc_layer=True)
    jax.block_until_ready((f1, f2))
    s1 = jnp.tanh(feats2[:, :h2] @ w_fs2 + b_fs2)
    s2 = jnp.tanh(feats2[:, h2:in2] @ w_sc2 + b_sc2)
    assert jnp.allclose(f1, s1, atol=2e-4), "case2 emb1 mismatch"
    assert jnp.allclose(f2, s2, atol=2e-4), "case2 emb2 mismatch"

    # ---- Case 3: bf16 HBM-facing outputs (math stays f32 inside VMEM).
    g1, g2 = roberta_cosine_head(feats1, w_fs1, b_fs1, w_sc1, b_sc1,
                                 input_size=in1, add_fc_layer=True,
                                 out_dtype=jnp.bfloat16)
    jax.block_until_ready((g1, g2))
    assert g1.dtype == jnp.bfloat16 and g2.dtype == jnp.bfloat16
    assert jnp.allclose(g1.astype(jnp.float32), r1, atol=1.5e-2), "case3 emb1"
    assert jnp.allclose(g2.astype(jnp.float32), r2, atol=1.5e-2), "case3 emb2"

    # ---- Case 4: add_fc_layer == False -> pure split (no kernel work).
    p1, p2 = roberta_cosine_head(feats1, w_fs1, b_fs1, w_sc1, b_sc1,
                                 input_size=in1, add_fc_layer=False)
    assert jnp.array_equal(p1, feats1[:, :h1])
    assert jnp.array_equal(p2, feats1[:, h1:in1])

    print("KERNEL_OK")
</pallas_src>

<mosaic_0001>
module attributes {stable_mosaic.version = 11 : i64} {
  func.func @_fused_bd_kernel(%arg0: i32, %arg1: memref<8x64xf32, #tpu.memory_space<vmem>>, %arg2: memref<64x256xf32, #tpu.memory_space<vmem>>, %arg3: memref<1x256xf32, #tpu.memory_space<vmem>>, %arg4: memref<8x128xf32, #tpu.memory_space<vmem>>, %arg5: memref<8x128xf32, #tpu.memory_space<vmem>>) attributes {dimension_semantics = [#tpu.dimension_semantics<parallel>], iteration_bounds = array<i64: 2>, scalar_prefetch = 0 : i64, scratch_operands = 0 : i64, tpu.core_type = #tpu.core_type<tc>, window_params = [{transform_indices = @transform_0, window_bounds = array<i64: 8, 64>}, {pipeline_mode = #tpu.pipeline_mode<synchronous>, transform_indices = @transform_1, window_bounds = array<i64: 64, 256>}, {pipeline_mode = #tpu.pipeline_mode<synchronous>, transform_indices = @transform_2, window_bounds = array<i64: 1, 256>}, {transform_indices = @transform_3, window_bounds = array<i64: 8, 128>}, {transform_indices = @transform_4, window_bounds = array<i64: 8, 128>}]} {
    %c0 = arith.constant 0 : index
    %c0_0 = arith.constant 0 : index
    %0 = vector.load %arg1[%c0, %c0_0] : memref<8x64xf32, #tpu.memory_space<vmem>>, vector<8x64xf32>
    %c0_1 = arith.constant 0 : index
    %c0_2 = arith.constant 0 : index
    %1 = vector.load %arg2[%c0_1, %c0_2] : memref<64x256xf32, #tpu.memory_space<vmem>>, vector<64x256xf32>
    %cst = arith.constant dense<0.000000e+00> : vector<8x256xf32>
    %2 = tpu.matmul %0, %1, %cst {dimension_numbers = #tpu.dot_dimension_numbers<[1], [0], [0], [1], [0, 0, 1, 1], [], []>} : vector<8x64xf32>, vector<64x256xf32>, vector<8x256xf32> -> vector<8x256xf32>
    %c0_3 = arith.constant 0 : index
    %c0_4 = arith.constant 0 : index
    %3 = vector.load %arg3[%c0_3, %c0_4] : memref<1x256xf32, #tpu.memory_space<vmem>>, vector<1x256xf32>
    %4 = vector.broadcast %3 : vector<1x256xf32> to vector<8x256xf32>
    %5 = arith.addf %2, %4 : vector<8x256xf32>
    %6 = math.tanh %5 : vector<8x256xf32>
    %7 = vector.extract_strided_slice %6 {offsets = [0, 0], sizes = [8, 128], strides = [1, 1]} : vector<8x256xf32> to vector<8x128xf32>
    %c0_5 = arith.constant 0 : index
    %c0_6 = arith.constant 0 : index
    %8 = vector.load %arg4[%c0_5, %c0_6] : memref<8x128xf32, #tpu.memory_space<vmem>>, vector<8x128xf32>
    tpu.vector_store %arg4[%c0_5, %c0_6], %7 {strides = array<i32>} : memref<8x128xf32, #tpu.memory_space<vmem>>, vector<8x128xf32>,
    %9 = vector.extract_strided_slice %6 {offsets = [0, 128], sizes = [8, 128], strides = [1, 1]} : vector<8x256xf32> to vector<8x128xf32>
    %c0_7 = arith.constant 0 : index
    %c0_8 = arith.constant 0 : index
    %10 = vector.load %arg5[%c0_7, %c0_8] : memref<8x128xf32, #tpu.memory_space<vmem>>, vector<8x128xf32>
    tpu.vector_store %arg5[%c0_7, %c0_8], %9 {strides = array<i32>} : memref<8x128xf32, #tpu.memory_space<vmem>>, vector<8x128xf32>,
    return
  }
  func.func @transform_0(%arg0: i32) -> (i32, i32) {
    %c0_i32 = arith.constant 0 : i32
    %c0_i32_0 = arith.constant 0 : i32
    return %arg0, %c0_i32 : i32, i32
  }
  func.func @transform_1(%arg0: i32) -> (i32, i32) {
    %c0_i32 = arith.constant 0 : i32
    %c0_i32_0 = arith.constant 0 : i32
    %c0_i32_1 = arith.constant 0 : i32
    return %c0_i32, %c0_i32_0 : i32, i32
  }
  func.func @transform_2(%arg0: i32) -> (i32, i32) {
    %c0_i32 = arith.constant 0 : i32
    %c0_i32_0 = arith.constant 0 : i32
    %c0_i32_1 = arith.constant 0 : i32
    return %c0_i32, %c0_i32_0 : i32, i32
  }
  func.func @transform_3(%arg0: i32) -> (i32, i32) {
    %c0_i32 = arith.constant 0 : i32
    %c0_i32_0 = arith.constant 0 : i32
    return %arg0, %c0_i32 : i32, i32
  }
  func.func @transform_4(%arg0: i32) -> (i32, i32) {
    %c0_i32 = arith.constant 0 : i32
    %c0_i32_0 = arith.constant 0 : i32
    return %arg0, %c0_i32 : i32, i32
  }
}

</mosaic_0001>

<bundles_post_ra>
// kernel: tpu_custom_call.1
= control target key start
LH: loop header
LB: loop body
LE: loop exit
PB: predicated region body
PF: predicated region fallthrough
CT: control target
= control target key end

     0   :  { %10 = vsyncpa [#allocation3], 0  ;;  %s982_s0 = inlined_call_operand.hbm [shape: f32[12,64], index: 0, kind: input, shape index: {}]   ;;  %s983_s1 = inlined_call_operand.hbm [shape: f32[64,256], index: 1, kind: input, shape index: {}]   ;;  %s984_s2 = inlined_call_operand.hbm [shape: f32[1,256], index: 2, kind: input, shape index: {}]   ;;  %s985_s3 = inlined_call_operand.hbm [shape: f32[12,128], index: 3, kind: output, shape index: {0}]   ;;  %s986_s4 = inlined_call_operand.hbm [shape: f32[12,128], index: 4, kind: output, shape index: {1}]  }
   0x1   :  { %12 = vsyncpa [#allocation3 + $0x1], 0 }
   0x2   :  { %13 = vsyncpa [#allocation6], 0 }
   0x3   :  { %14 = vsyncpa [#allocation4], 0 }
   0x4   :  { %16 = vsyncpa [#allocation4 + $0x1], 0 }
   0x5   :  { %17 = vsyncpa [#allocation10], 0 }
   0x6   :  { %19 = vsyncpa [#allocation10 + $0x1], 0  ;;  %s807_s15 = smov 0   ;;  %s809_s16 = smov 0  }
   0x7   :  { %s811_s17 = smov 0   ;;  %s813_s18 = smov 0  }
   0x8 LB: > { %s161_s21 = sshll.u32 %s983_s1, 4  ;;  %s831_s22 = sadd.s32 4294967295, %s776_s18   ;;  %s776_s18 = sphi %s813_s18, %s997_s18   ;;  %s772_s17 = sphi %s811_s17, %s996_s17   ;;  %s768_s16 = sphi %s809_s16, %s995_s16   ;;  %s764_s15 = sphi %s807_s15, %s994_s15   ;;  %s162_s21 = int_to_ptr.hbm [resolvable:$true] %s161_s21 }
   0x9   : > { %p486_p0 = scmp.ge.s32.totalorder %s776_s18, 1  ;;  %p46_p1 = scmp.eq.s32.totalorder %s831_s22, 0 }
   0xa   : > { %p150_p2 = scmp.lt.s32.totalorder %s776_s18, 3  ;;  %s778_s24 = smov [#allocation5]  }
   0xb   : > { %s163_s25 = sshll.u32 %s778_s24, 4  ;;  %s176_s28 = sshll.u32 %s984_s2, 4  ;;  %s164_s25 = int_to_ptr.vmem [resolvable:$true] %s163_s25  ;;  %s177_s28 = int_to_ptr.hbm [resolvable:$true] %s176_s28 }
   0xc   : > { %p836_p3 = pnand %p486_p0, %p150_p2  ;;  %s779_s29 = smov [#allocation7]  }
   0xd   : > { %s178_s30 = sshll.u32 %s779_s29, 4  ;;  %s780_s5 = smov 256   ;;  %s179_s30 = int_to_ptr.vmem [resolvable:$true] %s178_s30 }
   0xe   : > { %p520_p4 = pneg %p836_p3  ;;  %s781_s6 = smov 16  }
   0xf   : > { %s485_s7 = sadd.s32 4294967294, %s776_s18   ;;  %s850_s8 = sadd.s32 1, %s776_s18  }
  0x10   : > { %p521_p6 = pnand %p520_p4, %p46_p1  ;;  %s29_s9 = ssub.s32 %s776_s18, %s850_s8 }
  0x11   : > { %s32_s10 = sadd.s32 1, %s772_s17  ;;  %p30_p7 = scmp.eq.s32.totalorder %s29_s9, 0 }
  0x12   : > { %523 = dma.hbm_to_vmem [thread:$0]  (!%p521_p6), %s162_s21, 2048, %s164_s25, [#allocation6], %s780_s5, %s780_s5, %s781_s6  }
  0x13   : > { %526 = dma.hbm_to_vmem [thread:$0]  (!%p521_p6), %s177_s28, 32, %s179_s30, [#allocation6]  }
  0x14   : > { %p39_p8 = scmp.ne.s32.totalorder %s772_s17, %s768_s16  ;;  %p40_p9 = scmp.eq.s32.totalorder %s776_s18, 0 }
  0x15   : > { %p45_p10 = scmp.ne.s32.totalorder %s768_s16, %s764_s15  ;;  %p111_p13 = scmp.eq.s32.totalorder %s831_s22, 1 }
  0x16   : > { %s861_s11 = scalar_select %p30_p7, %s772_s17, %s32_s10  }
  0x17   : > { %p863_p11 = por %p40_p9, %p39_p8  ;;  %p869_p12 = por %p46_p1, %p45_p10 }
  0x18   : > { %p117_p0 = scmp.eq.s32.totalorder %s485_s7, 1  ;;  %p540_p2 = scmp.lt.s32.totalorder %s776_s18, 2 }
  0x19   : > { %s189_s14 = sand.u32 1, %s772_s17   ;;  %p876_p4 = por %p111_p13, %p39_p8 }
  0x1a   : > { %p880_p6 = por %p117_p0, %p45_p10  ;;  %s490_s21 = sshll.u32 %s189_s14, 3 }
  0x1b   : > { %s491_s24 = sshll.u32 %s776_s18, 3  ;;  %s193_s28 = scalar_lea.vmem [#allocation2], %s490_s21 }
  0x1c   : > { %s197_s27 = scalar_lea.hbm %s982_s0, %s491_s24  ;;  %s201_s29 = sshll.u32 %s193_s28, 4  ;;  %s202_s29 = int_to_ptr.vmem [resolvable:$true] %s201_s29 }
  0x1d   : > { %s199_s30 = sshll.u32 %s197_s27, 4  ;;  %p890_p7 = pnand %p540_p2, %p863_p11  ;;  %s200_s30 = int_to_ptr.hbm [resolvable:$true] %s199_s30 }
  0x1e   : > { %s190_s6 = scalar_lea.sflag [#allocation3], %s189_s14  ;;  %s644_s7 = sshra.s32 %s200_s30, 4  ;;  %s645_s7 = int_to_ptr.hbm [resolvable:$true] %s644_s7 }
  0x1f   : > { %s646_s9 = scalar_lea.hbm %s645_s7, 8  ;;  %p648_p9 = pneg %p890_p7 }
  0x20   : > { %p647_p8 = scmp.ne.s32.totalorder %s645_s7, %s646_s9  ;;  %s651_s24 = scalar_lea.hbm %s982_s0, 16 }
  0x21   : > { %p652_p11 = scmp.lt.s32.totalorder %s645_s7, %s982_s0  ;;  %p653_p0 = scmp.lt.s32.totalorder %s651_s24, %s646_s9 }
  0x22   : > { %p649_p10 = pnand %p648_p9, %p647_p8 }
  0x23   : > { %p654_p2 = por %p653_p0, %p652_p11 }
  0x24   : > { %p650_p13 = pneg %p649_p10 }
  0x26   : > { %p655_p5 = pnand %p654_p2, %p650_p13 }
  0x28   : > { %658 = shalt.err (!%p655_p5)
}
  0x29   : > { %530 = dma.hbm_to_vmem [thread:$0]  (!%p890_p7), %s200_s30, 128, %s202_s29, %s190_s6  }
  0x2a   : > { %210 = sbr.rel (%p836_p3) target bundleno = 216 (0xd8), region = 32  ;;  %s907_s14 = sand.u32 (!%p836_p3), 1, %s768_s16  }
  0x2b   : > { %s910_s26 = sshll.u32 (!%p836_p3), %s907_s14, 3  ;;  %s213_s27 = scalar_lea.sflag (!%p836_p3), [#allocation3], %s907_s14 }
  0x2c   : > { %s216_s28 = scalar_lea.vmem (!%p836_p3), [#allocation2], %s910_s26 }
  0x2f   : > { %747 = dma.done.wait (%p869_p12), %s213_s27, 128  }
  0x30   : > { %749 = vsyncadd (%p869_p12), %s213_s27, 4294967168 }
  0x31   : > { %751 = dma.done.wait (%p46_p1), [#allocation6], 2080  }
  0x32   : > { %753 = vsyncadd (%p46_p1), [#allocation6], 4294965216  ;;  %v272_v0 = vld [vmem:[#allocation5 + $0x70] sm:$0xff]  ;;  %v273_v1 = vld [vmem:[#allocation5 + $0x78] sm:$0xff]  ;;  %vm280_vm0 = vcmask 523264   ;;  %s502_s23 = sshll.u32 %s831_s22, 3 }
  0x33   : > { %v270_v2 = vld [vmem:[#allocation5 + $0x60] sm:$0xff]  ;;  %292 = vmatpush.msra.mxu0 %v272_v0  ;;  %312 = vmatpush.msra.mxu1 %v273_v1  ;;  %v271_v3 = vld [vmem:[#allocation5 + $0x68] sm:$0xff]  ;;  %v268_v4 = vld [vmem:[#allocation5 + $0x50] sm:$0xff]  ;;  %s344_s30 = scalar_lea.hbm %s985_s3, %s502_s23  ;;  %s358_s7 = scalar_lea.hbm %s986_s4, %s502_s23 }
  0x34   : > { %v269_v5 = vld [vmem:[#allocation5 + $0x58] sm:$0xff]  ;;  %v266_v6 = vld [vmem:[#allocation5 + $0x40] sm:$0xff]  ;;  %v267_v7 = vld [vmem:[#allocation5 + $0x48] sm:$0xff]  ;;  %s249_s9 = scalar_lea.vmem [#allocation8], %s910_s26  ;;  %s348_s21 = sshll.u32 %s344_s30, 4  ;;  %s349_s21 = int_to_ptr.hbm [resolvable:$true] %s348_s21 }
  0x35   : > { %293 = vmatpush.msra.mxu0 %v270_v2  ;;  %313 = vmatpush.msra.mxu1 %v271_v3  ;;  %v264_v8 = vld [vmem:[#allocation5 + $0x30] sm:$0xff]  ;;  %v265_v9 = vld [vmem:[#allocation5 + $0x38] sm:$0xff]  ;;  %v262_v10 = vld [vmem:[#allocation5 + $0x20] sm:$0xff]  ;;  %s346_s10 = sshll.u32 %s249_s9, 4  ;;  %s256_s22 = scalar_lea.vmem [#allocation9], %s910_s26  ;;  %s347_s10 = int_to_ptr.vmem [resolvable:$true] %s346_s10 }
  0x36   : > { %v263_v11 = vld [vmem:[#allocation5 + $0x28] sm:$0xff]  ;;  %v260_v12 = vld [vmem:[#allocation5 + $0x10] sm:$0xff]  ;;  %v261_v13 = vld [vmem:[#allocation5 + $0x18] sm:$0xff]  ;;  %s933_s24 = sshll.u32 %s256_s22, 4  ;;  %s362_s25 = sshll.u32 %s358_s7, 4  ;;  %s361_s24 = int_to_ptr.vmem [resolvable:$true] %s933_s24  ;;  %s936_s25 = int_to_ptr.hbm [resolvable:$true] %s362_s25 }
  0x37   : > { %294 = vmatpush.msra.mxu0 %v268_v4  ;;  %314 = vmatpush.msra.mxu1 %v269_v5  ;;  %v258_v14 = vld [vmem:[#allocation5] sm:$0xff]  ;;  %v259_v15 = vld [vmem:[#allocation5 + $0x8] sm:$0xff]  ;;  %v257_v16 = vld [vmem:[%s216_s28] sm:$0xff]  ;;  %s329_s12 = scalar_lea.sflag [#allocation4], %s907_s14  ;;  %s688_s27 = sshra.s32 %s349_s21, 4  ;;  %s689_s27 = int_to_ptr.hbm [resolvable:$true] %s688_s27 }
  0x38   : > { %v274_v17 = vld [vmem:[#allocation7] sm:$0x3]  ;;  %s690_s28 = scalar_lea.hbm %s689_s27, 8  ;;  %s694_s13 = scalar_lea.hbm %s985_s3, 16 }
  0x39   : > { %295 = vmatpush.msra.mxu0 %v266_v6  ;;  %315 = vmatpush.msra.mxu1 %v267_v7  ;;  %v276_v18 = vperm.slane %v274_v17, 0  ;;  %v277_v19 = vperm.slane %v274_v17, 1  ;;  %p691_p1 = scmp.ne.s32.totalorder %s689_s27, %s690_s28  ;;  %p695_p12 = scmp.lt.s32.totalorder %s689_s27, %s985_s3 }
  0x3a   : > { %p696_p7 = scmp.lt.s32.totalorder %s694_s13, %s690_s28 }
  0x3b   : > { %296 = vmatpush.msra.mxu0 %v264_v8  ;;  %316 = vmatpush.msra.mxu1 %v265_v9  ;;  %p692_p3 = pnand %p691_p1, %p876_p4 }
  0x3c   : > { %p697_p8 = por %p696_p7, %p695_p12 }
  0x3d   : > { %297 = vmatpush.msra.mxu0 %v262_v10  ;;  %317 = vmatpush.msra.mxu1 %v263_v11  ;;  %p693_p5 = pneg %p692_p3 }
  0x3f   : > { %298 = vmatpush.msra.mxu0 %v260_v12  ;;  %318 = vmatpush.msra.mxu1 %v261_v13  ;;  %p698_p9 = pnand %p697_p8, %p693_p5 }
  0x41   : > { %299 = vmatpush.msra.mxu0 %v258_v14  ;;  %319 = vmatpush.msra.mxu1 %v259_v15 }
  0x42   : > { %498 = vmatmul.msk.f32.vlgmr.msra.gmra.mxu0 %vm280_vm0, %v257_v16  ;;  %499 = vmatmul.msk.f32.vlgmr.msra.gmra.mxu1 %vm280_vm0, %v257_v16 }
  0xbf   : > { %v301_v20 = vpop.f32.mrf.mxu0  ;;  %v321_v21 = vpop.f32.mrf.mxu1 }
  0xc0   : > { %v302_v22 = vadd.f32 %v301_v20, %v276_v18  ;;  %v322_v23 = vadd.f32 %v321_v21, %v277_v19 }
  0xc2   : > { %580 = vtanh.f32 %v302_v22 }
  0xc3   : > { %582 = vtanh.f32 %v322_v23 }
  0xc8   : > { %v581_v24 = vpop.eup %580 }
  0xc9   : > { %v583_v25 = vpop.eup %582  ;;  %326 = vst [vmem:[%s249_s9] sm:$0xff] %v581_v24 }
  0xca   : > { %701 = shalt.err (!%p698_p9)
}
  0xcb   : > { %516 = dma.vmem_to_hbm [thread:$0]  (%p876_p4), %s347_s10, 128, %s349_s21, %s329_s12   ;;  %327 = vst [vmem:[%s256_s22] sm:$0xff] %v583_v25 }
  0xcc   : > { %s334_s5 = scalar_lea.sflag [#allocation10], %s907_s14  ;;  %s716_s6 = sshra.s32 %s936_s25, 4  ;;  %s717_s6 = int_to_ptr.hbm [resolvable:$true] %s716_s6 }
  0xcd   : > { %s718_s7 = scalar_lea.hbm %s717_s6, 8  ;;  %s722_s28 = scalar_lea.hbm %s986_s4, 16 }
  0xce   : > { %p719_p10 = scmp.ne.s32.totalorder %s717_s6, %s718_s7  ;;  %p723_p0 = scmp.lt.s32.totalorder %s717_s6, %s986_s4 }
  0xcf   : > { %p724_p2 = scmp.lt.s32.totalorder %s722_s28, %s718_s7 }
  0xd0   : > { %p720_p13 = pnand %p719_p10, %p876_p4 }
  0xd1   : > { %p725_p1 = por %p724_p2, %p723_p0 }
  0xd2   : > { %p721_p11 = pneg %p720_p13 }
  0xd4   : > { %p726_p3 = pnand %p725_p1, %p721_p11 }
  0xd6   : > { %729 = shalt.err (!%p726_p3)
}
  0xd7   : > { %517 = dma.vmem_to_hbm [thread:$0]  (%p876_p4), %s361_s24, 128, %s936_s25, %s334_s5  }
  0xd8 PF: > { %s374_s14 = sand.u32 1, %s764_s15   ;;  %p993_p5 = scmp.ge.s32.totalorder %s776_s18, 2 }
  0xd9   : > { %s375_s10 = scalar_lea.sflag [#allocation4], %s374_s14 }
  0xda   : > { %p532_p12 = pnand %p993_p5, %p880_p6 }
  0xdc   : > { %p533_p7 = pneg %p532_p12 }
  0xde   : > { %755 = dma.done.wait (%p533_p7), %s375_s10, 128  }
  0xdf   : > { %757 = vsyncadd (%p533_p7), %s375_s10, 4294967168  ;;  %s385_s21 = scalar_lea.sflag [#allocation10], %s374_s14 }
  0xe0   : > { %759 = dma.done.wait (%p533_p7), %s385_s21, 128  }
  0xe1   : > { %761 = vsyncadd (%p533_p7), %s385_s21, 4294967168  ;;  %p22_p4 = scmp.ge.s32.totalorder %s850_s8, 4   ;;  %s994_s15 = smov %s768_s16 }
  0xe2   : > { %s995_s16 = smov %s772_s17  ;;  %s996_s17 = smov %s861_s11 }
  0xe3   : > { %s997_s18 = smov %s850_s8  ;;  %24 = sbr.rel (!%p22_p4) target bundleno = 8 (0x8), region = 102 }
  0xe8   :  { %391 = vsyncpa [#allocation3], 1 }
  0xe9   :  { %393 = vsyncpa [#allocation3 + $0x1], 1 }
  0xea   :  { %394 = vsyncpa [#allocation6], 1 }
  0xeb   :  { %395 = vsyncpa [#allocation4], 1 }
  0xec   :  { %397 = vsyncpa [#allocation4 + $0x1], 1 }
  0xed   :  { %398 = vsyncpa [#allocation10], 1 }
  0xee   :  { %400 = vsyncpa [#allocation10 + $0x1], 1 }

</bundles_post_ra>
